<compile_context>
chip_gen: v6e
topology: v6e:2x2x1
jax: 0.10.0
libtpu: 0.0.40
codegen_flags: <defaults>
</compile_context>

<pallas_src>
from functools import partial

import jax
import jax.numpy as jnp
from jax.experimental import pallas as pl
from jax.experimental.pallas import tpu as pltpu


def gru_seq_kernel(gi_ref, h0_ref, whh_ref, bhn_ref, hseq_ref, h_acc):
    """One timestep of the GRU recurrence (PyTorch GRUCell semantics).

    gi_ref  : (1, Bt, 3H) f32  precomputed x@W_ih^T + b_ih (+ b_hh on r/z), step t
    h0_ref  : (Bt, H)     f32  initial hidden for this batch shard
    whh_ref : (H, 3H)     bf16 hidden->hidden weights (transposed), gates [r|z|n]
    bhn_ref : (1, H)      f32  b_hh for the n gate only
    hseq_ref: (1, Bt, H)  f32  hidden state emitted at step t
    h_acc   : (Bt, H)     f32  VMEM scratch carrying the recurrent state
    """
    t = pl.program_id(1)

    @pl.when(t == 0)
    def _():
        h_acc[...] = h0_ref[...]

    h = h_acc[...]                                            # (Bt, H) f32
    # Recurrent matmul: bf16 operands, f32 accumulation on the MXU.
    gh = jnp.dot(h.astype(whh_ref.dtype), whh_ref[...],
                 preferred_element_type=jnp.float32)          # (Bt, 3H) f32
    gi = gi_ref[0]                                            # (Bt, 3H) f32

    H = h.shape[-1]
    # Gate slices are 128-lane aligned (H == 128): no cross-lane shuffles.
    r = jax.nn.sigmoid(gi[:, 0 * H:1 * H] + gh[:, 0 * H:1 * H])
    z = jax.nn.sigmoid(gi[:, 1 * H:2 * H] + gh[:, 1 * H:2 * H])
    n = jnp.tanh(gi[:, 2 * H:3 * H] + r * (gh[:, 2 * H:3 * H] + bhn_ref[...]))

    h_new = (1.0 - z) * n + z * h
    h_acc[...] = h_new
    hseq_ref[0] = h_new.astype(hseq_ref.dtype)


def encoder_rnn_forward(tokens, hidden0, params, *, batch_tile=8):
    """Runs EncoderRNN.forward for every timestep of `tokens`.

    tokens : (T, B) int32 token ids
    hidden0: (B, H) f32 initial hidden (initHidden() broadcast over batch)
    Returns (T, B, H): hidden after each step; final hidden == result[-1].
    """
    emb = params["embedding"]
    w_ih_t = params["w_ih_t"]         # (H, 3H) f32
    w_hh_t = params["w_hh_t"]         # (H, 3H) bf16
    b_ih = params["b_ih"]             # (3H,)  f32
    b_hh = params["b_hh"]             # (3H,)  f32

    T, B = tokens.shape
    H = hidden0.shape[-1]
    assert B % batch_tile == 0, "batch must be a multiple of batch_tile"

    # ---- Bulk input projection (no recurrent dependency): one big MXU matmul.
    # Fold b_hh into the r/z gate columns; b_hh_n must stay separate.
    gi_bias = b_ih + jnp.concatenate(
        [b_hh[: 2 * H], jnp.zeros((H,), b_hh.dtype)])
    x = jnp.take(emb, tokens.reshape(-1), axis=0)             # (T*B, H)
    gi = (x @ w_ih_t + gi_bias).reshape(T, B, 3 * H)          # (T, B, 3H)
    b_hh_n = b_hh[2 * H:].reshape(1, H)

    grid = (B // batch_tile, T)       # (batch shards, timesteps)

    h_seq = pl.pallas_call(
        gru_seq_kernel,
        out_shape=jax.ShapeDtypeStruct((T, B, H), hidden0.dtype),
        grid_spec=pltpu.PrefetchScalarGridSpec(
            num_scalar_prefetch=0,
            grid=grid,
            in_specs=[
                # Per-step input projection: streamed, default double-buffered.
                pl.BlockSpec((1, batch_tile, 3 * H), lambda b, t: (t, b, 0)),
                # Initial hidden for this batch shard (constant over time).
                pl.BlockSpec((batch_tile, H), lambda b, t: (b, 0)),
                # Recurrent weights: constant index_map -> VMEM-resident.
                pl.BlockSpec((H, 3 * H), lambda b, t: (0, 0)),
                # n-gate hidden bias: resident.
                pl.BlockSpec((1, H), lambda b, t: (0, 0)),
            ],
            out_specs=pl.BlockSpec((1, batch_tile, H), lambda b, t: (t, b, 0)),
            scratch_shapes=[pltpu.VMEM((batch_tile, H), jnp.float32)],
        ),
        compiler_params=pltpu.CompilerParams(
            dimension_semantics=("parallel", "arbitrary"),
        ),
    )(gi, hidden0, w_hh_t, b_hh_n)
    return h_seq


def init_params(key, input_size, hidden_size):
    """Deterministic synthetic parameters matching nn.Embedding + nn.GRUCell."""
    k_emb, k_wih, k_whh, k_bih, k_bhh = jax.random.split(key, 5)
    bound = 1.0 / (hidden_size ** 0.5)
    emb = jax.random.normal(k_emb, (input_size, hidden_size), jnp.float32)
    # PyTorch stores weight_ih/weight_hh as (3H, H); we keep them transposed.
    w_ih = jax.random.uniform(k_wih, (3 * hidden_size, hidden_size),
                              jnp.float32, -bound, bound)
    w_hh = jax.random.uniform(k_whh, (3 * hidden_size, hidden_size),
                              jnp.float32, -bound, bound)
    b_ih = jax.random.uniform(k_bih, (3 * hidden_size,), jnp.float32, -bound, bound)
    b_hh = jax.random.uniform(k_bhh, (3 * hidden_size,), jnp.float32, -bound, bound)
    return {
        "embedding": emb,
        "w_ih_t": w_ih.T,                           # (H, 3H) f32 (one-shot wrapper matmul)
        "w_hh_t": w_hh.T.astype(jnp.bfloat16),      # (H, 3H) bf16 (in-loop, VMEM-resident)
        "b_ih": b_ih,
        "b_hh": b_hh,
    }


def _reference(tokens, hidden0, params):
    """Step-by-step pure-JAX reference with PyTorch GRUCell formulas."""
    emb, w_ih_t, w_hh_t = params["embedding"], params["w_ih_t"], params["w_hh_t"]
    b_ih, b_hh = params["b_ih"], params["b_hh"]
    H = hidden0.shape[-1]
    h = hidden0
    outs = []
    for t in range(tokens.shape[0]):
        x = jnp.take(emb, tokens[t], axis=0)                       # (B, H)
        gi = x @ w_ih_t + b_ih                                     # (B, 3H)
        gh = jnp.dot(h.astype(w_hh_t.dtype), w_hh_t,
                     preferred_element_type=jnp.float32) + b_hh    # (B, 3H)
        r = jax.nn.sigmoid(gi[:, :H] + gh[:, :H])
        z = jax.nn.sigmoid(gi[:, H:2 * H] + gh[:, H:2 * H])
        n = jnp.tanh(gi[:, 2 * H:] + r * gh[:, 2 * H:])
        h = (1.0 - z) * n + z * h
        outs.append(h)
    return jnp.stack(outs, axis=0)


if __name__ == "__main__":
    vocab_size = 64       # small synthetic vocabulary
    hidden_size = 128     # lane-aligned hidden dim (gate slices hit 128-lane tiles)
    batch = 16            # two sublane-full batch shards of 8
    seq_len = 12
    batch_tile = 8

    key = jax.random.PRNGKey(0)
    k_params, k_tok = jax.random.split(key)
    params = init_params(k_params, vocab_size, hidden_size)

    tokens = jax.random.randint(k_tok, (seq_len, batch), 0, vocab_size,
                                dtype=jnp.int32)
    hidden0 = jnp.zeros((batch, hidden_size), jnp.float32)   # initHidden()

    fwd = jax.jit(partial(encoder_rnn_forward, batch_tile=batch_tile))
    h_seq = fwd(tokens, hidden0, params)
    h_seq = jax.block_until_ready(h_seq)

    ref = _reference(tokens, hidden0, params)
    assert h_seq.shape == (seq_len, batch, hidden_size)
    err = float(jnp.max(jnp.abs(h_seq - ref)))
    assert err < 2e-3, f"max abs error {err}"

    print("KERNEL_OK")
</pallas_src>

<mosaic_0001>
module attributes {stable_mosaic.version = 11 : i64} {
  func.func @gru_seq_kernel(%arg0: i32, %arg1: i32, %arg2: memref<1x8x384xf32, #tpu.memory_space<vmem>>, %arg3: memref<8x128xf32, #tpu.memory_space<vmem>>, %arg4: memref<128x384xbf16, #tpu.memory_space<vmem>>, %arg5: memref<1x128xf32, #tpu.memory_space<vmem>>, %arg6: memref<1x8x128xf32, #tpu.memory_space<vmem>>, %arg7: memref<8x128xf32, #tpu.memory_space<vmem>>) attributes {dimension_semantics = [#tpu.dimension_semantics<parallel>, #tpu.dimension_semantics<arbitrary>], iteration_bounds = array<i64: 2, 12>, scalar_prefetch = 0 : i64, scratch_operands = 1 : i64, tpu.core_type = #tpu.core_type<tc>, window_params = [{transform_indices = @transform_0, window_bounds = array<i64: 1, 8, 384>}, {transform_indices = @transform_1, window_bounds = array<i64: 8, 128>}, {pipeline_mode = #tpu.pipeline_mode<synchronous>, transform_indices = @transform_2, window_bounds = array<i64: 128, 384>}, {pipeline_mode = #tpu.pipeline_mode<synchronous>, transform_indices = @transform_3, window_bounds = array<i64: 1, 128>}, {transform_indices = @transform_4, window_bounds = array<i64: 1, 8, 128>}]} {
    %c0_i32 = arith.constant 0 : i32
    %0 = arith.cmpi eq, %arg1, %c0_i32 : i32
    %1 = arith.extui %0 : i1 to i32
    %c0_i32_0 = arith.constant 0 : i32
    %2 = arith.cmpi ne, %1, %c0_i32_0 : i32
    scf.if %2 {
      %c0_17 = arith.constant 0 : index
      %c0_18 = arith.constant 0 : index
      %42 = vector.load %arg3[%c0_17, %c0_18] : memref<8x128xf32, #tpu.memory_space<vmem>>, vector<8x128xf32>
      %c0_19 = arith.constant 0 : index
      %c0_20 = arith.constant 0 : index
      %43 = vector.load %arg7[%c0_19, %c0_20] : memref<8x128xf32, #tpu.memory_space<vmem>>, vector<8x128xf32>
      tpu.vector_store %arg7[%c0_19, %c0_20], %42 {strides = array<i32>} : memref<8x128xf32, #tpu.memory_space<vmem>>, vector<8x128xf32>,
    } else {
    }
    %c0 = arith.constant 0 : index
    %c0_1 = arith.constant 0 : index
    %3 = vector.load %arg7[%c0, %c0_1] : memref<8x128xf32, #tpu.memory_space<vmem>>, vector<8x128xf32>
    %4 = arith.truncf %3 : vector<8x128xf32> to vector<8x128xbf16>
    %c0_2 = arith.constant 0 : index
    %c0_3 = arith.constant 0 : index
    %5 = vector.load %arg4[%c0_2, %c0_3] : memref<128x384xbf16, #tpu.memory_space<vmem>>, vector<128x384xbf16>
    %cst = arith.constant dense<0.000000e+00> : vector<8x384xf32>
    %6 = tpu.matmul %4, %5, %cst {dimension_numbers = #tpu.dot_dimension_numbers<[1], [0], [0], [1], [0, 0, 1, 1], [], []>} : vector<8x128xbf16>, vector<128x384xbf16>, vector<8x384xf32> -> vector<8x384xf32>
    %c0_4 = arith.constant 0 : index
    %c0_5 = arith.constant 0 : index
    %c0_6 = arith.constant 0 : index
    %7 = vector.load %arg2[%c0_4, %c0_5, %c0_6] : memref<1x8x384xf32, #tpu.memory_space<vmem>>, vector<1x8x384xf32>
    %8 = vector.shape_cast %7 : vector<1x8x384xf32> to vector<8x384xf32>
    %9 = vector.extract_strided_slice %8 {offsets = [0, 0], sizes = [8, 128], strides = [1, 1]} : vector<8x384xf32> to vector<8x128xf32>
    %10 = vector.extract_strided_slice %6 {offsets = [0, 0], sizes = [8, 128], strides = [1, 1]} : vector<8x384xf32> to vector<8x128xf32>
    %11 = arith.addf %9, %10 : vector<8x128xf32>
    %12 = arith.negf %11 : vector<8x128xf32>
    %13 = math.exp %12 : vector<8x128xf32>
    %cst_7 = arith.constant 1.000000e+00 : f32
    %14 = vector.broadcast %cst_7 : f32 to vector<8x128xf32>
    %15 = arith.addf %14, %13 : vector<8x128xf32>
    %16 = arith.divf %14, %15 : vector<8x128xf32>
    %17 = vector.extract_strided_slice %8 {offsets = [0, 128], sizes = [8, 128], strides = [1, 1]} : vector<8x384xf32> to vector<8x128xf32>
    %18 = vector.extract_strided_slice %6 {offsets = [0, 128], sizes = [8, 128], strides = [1, 1]} : vector<8x384xf32> to vector<8x128xf32>
    %19 = arith.addf %17, %18 : vector<8x128xf32>
    %20 = arith.negf %19 : vector<8x128xf32>
    %21 = math.exp %20 : vector<8x128xf32>
    %cst_8 = arith.constant 1.000000e+00 : f32
    %22 = vector.broadcast %cst_8 : f32 to vector<8x128xf32>
    %23 = arith.addf %22, %21 : vector<8x128xf32>
    %24 = arith.divf %22, %23 : vector<8x128xf32>
    %25 = vector.extract_strided_slice %8 {offsets = [0, 256], sizes = [8, 128], strides = [1, 1]} : vector<8x384xf32> to vector<8x128xf32>
    %26 = vector.extract_strided_slice %6 {offsets = [0, 256], sizes = [8, 128], strides = [1, 1]} : vector<8x384xf32> to vector<8x128xf32>
    %c0_9 = arith.constant 0 : index
    %c0_10 = arith.constant 0 : index
    %27 = vector.load %arg5[%c0_9, %c0_10] : memref<1x128xf32, #tpu.memory_space<vmem>>, vector<1x128xf32>
    %28 = vector.broadcast %27 : vector<1x128xf32> to vector<8x128xf32>
    %29 = arith.addf %26, %28 : vector<8x128xf32>
    %30 = arith.mulf %16, %29 : vector<8x128xf32>
    %31 = arith.addf %25, %30 : vector<8x128xf32>
    %32 = math.tanh %31 : vector<8x128xf32>
    %cst_11 = arith.constant 1.000000e+00 : f32
    %33 = vector.broadcast %cst_11 : f32 to vector<8x128xf32>
    %34 = arith.subf %33, %24 : vector<8x128xf32>
    %35 = arith.mulf %34, %32 : vector<8x128xf32>
    %36 = arith.mulf %24, %3 : vector<8x128xf32>
    %37 = arith.addf %35, %36 : vector<8x128xf32>
    %c0_12 = arith.constant 0 : index
    %c0_13 = arith.constant 0 : index
    %38 = vector.load %arg7[%c0_12, %c0_13] : memref<8x128xf32, #tpu.memory_space<vmem>>, vector<8x128xf32>
    tpu.vector_store %arg7[%c0_12, %c0_13], %37 {strides = array<i32>} : memref<8x128xf32, #tpu.memory_space<vmem>>, vector<8x128xf32>,
    %c0_14 = arith.constant 0 : index
    %c0_15 = arith.constant 0 : index
    %c0_16 = arith.constant 0 : index
    %39 = vector.load %arg6[%c0_14, %c0_15, %c0_16] : memref<1x8x128xf32, #tpu.memory_space<vmem>>, vector<1x8x128xf32>
    %40 = vector.shape_cast %39 : vector<1x8x128xf32> to vector<8x128xf32>
    %41 = vector.shape_cast %37 : vector<8x128xf32> to vector<1x8x128xf32>
    tpu.vector_store %arg6[%c0_14, %c0_15, %c0_16], %41 {strides = array<i32>} : memref<1x8x128xf32, #tpu.memory_space<vmem>>, vector<1x8x128xf32>,
    return
  }
  func.func @transform_0(%arg0: i32, %arg1: i32) -> (i32, i32, i32) {
    %c0_i32 = arith.constant 0 : i32
    %c0_i32_0 = arith.constant 0 : i32
    return %arg1, %arg0, %c0_i32 : i32, i32, i32
  }
  func.func @transform_1(%arg0: i32, %arg1: i32) -> (i32, i32) {
    %c0_i32 = arith.constant 0 : i32
    %c0_i32_0 = arith.constant 0 : i32
    return %arg0, %c0_i32 : i32, i32
  }
  func.func @transform_2(%arg0: i32, %arg1: i32) -> (i32, i32) {
    %c0_i32 = arith.constant 0 : i32
    %c0_i32_0 = arith.constant 0 : i32
    %c0_i32_1 = arith.constant 0 : i32
    return %c0_i32, %c0_i32_0 : i32, i32
  }
  func.func @transform_3(%arg0: i32, %arg1: i32) -> (i32, i32) {
    %c0_i32 = arith.constant 0 : i32
    %c0_i32_0 = arith.constant 0 : i32
    %c0_i32_1 = arith.constant 0 : i32
    return %c0_i32, %c0_i32_0 : i32, i32
  }
  func.func @transform_4(%arg0: i32, %arg1: i32) -> (i32, i32, i32) {
    %c0_i32 = arith.constant 0 : i32
    %c0_i32_0 = arith.constant 0 : i32
    return %arg1, %arg0, %c0_i32 : i32, i32, i32
  }
}

</mosaic_0001>

<bundles_post_ra>
// kernel: encoder_rnn_forward.1
= control target key start
LH: loop header
LB: loop body
LE: loop exit
PB: predicated region body
PF: predicated region fallthrough
CT: control target
= control target key end

     0   :  { %9 = vsyncpa [#allocation4], 0  ;;  %s1170_s0 = inlined_call_operand.vmem [shape: f32[12,16,384], index: 0, kind: input, shape index: {}]   ;;  %s1171_s1 = inlined_call_operand.vmem [shape: f32[16,128], index: 1, kind: input, shape index: {}]   ;;  %s1172_s2 = inlined_call_operand.vmem [shape: bf16[128,384], index: 2, kind: input, shape index: {}]   ;;  %s1173_s3 = inlined_call_operand.vmem [shape: f32[1,128], index: 3, kind: input, shape index: {}]   ;;  %s1174_s4 = inlined_call_operand.hbm [shape: f32[12,16,128], index: 4, kind: output, shape index: {}]  }
   0x1   :  { %11 = vsyncpa [#allocation4 + $0x1], 0  ;;  %s945_s15 = smov 0   ;;  %s947_s16 = smov 0  }
   0x2   :  { %s949_s17 = smov 0   ;;  %s951_s18 = smov 0  }
   0x3   :  { %s953_s19 = smov 0   ;;  %s955_s20 = smov 0  }
   0x4   :  { %s957_s21 = smov 0   ;;  %s959_s22 = smov 0  }
   0x5 LB: > { %s634_s23 = sadd.s32 4294967295, %s914_s22   ;;  %s635_s24 = sadd.s32 4294967294, %s914_s22   ;;  %s914_s22 = sphi %s959_s22, %s17_s22   ;;  %s910_s21 = sphi %s957_s21, %s1191_s21   ;;  %s906_s20 = sphi %s955_s20, %s1190_s20   ;;  %s902_s19 = sphi %s953_s19, %s1189_s19   ;;  %s898_s18 = sphi %s951_s18, %s1188_s18   ;;  %s894_s17 = sphi %s949_s17, %s1187_s17   ;;  %s890_s16 = sphi %s947_s16, %s1186_s16   ;;  %s886_s15 = sphi %s945_s15, %s1185_s15  }
   0x6   : > { %s26_s25 = sadd.s32 1, %s906_s20  ;;  %s29_s26 = sadd.s32 1, %s910_s21 }
   0x7   : > { %p27_p0 = scmp.ge.s32.totalorder %s26_s25, 12  ;;  %p144_p1 = scmp.ne.s32.totalorder %s894_s17, %s890_s16 }
   0x8   : > { %p145_p2 = scmp.eq.s32.totalorder %s634_s23, 23  ;;  %p150_p5 = scmp.ne.s32.totalorder %s890_s16, %s886_s15 }
   0x9   : > { %s1193_s25 = smov (%p27_p0, %s26_s25), 0  ;;  %s1195_s26 = smov (!%p27_p0, %s29_s26), %s910_s21 }
   0xa   : > { %1178 = sst [smem:[#allocation6_spill]] %s1193_s25  ;;  %s129_s27 = ssub.s32 %s906_s20, %s1193_s25 }
   0xb   : > { %p996_p3 = por %p145_p2, %p144_p1  ;;  %p31_p4 = scmp.ge.s32.totalorder %s1195_s26, 2 }
   0xc   : > { %p151_p6 = scmp.eq.s32.totalorder %s635_s24, 23  ;;  %p638_p7 = scmp.ge.s32.totalorder %s914_s22, 1 }
   0xd   : > { %s1197_s26 = smov (%p31_p4, %s1195_s26), 0  ;;  %p194_p9 = scmp.lt.s32.totalorder %s914_s22, 25 }
   0xe   : > { %1180 = sst [smem:[#allocation7_spill]] %s1197_s26  ;;  %p1005_p8 = por %p151_p6, %p150_p5 }
   0xf   : > { %s130_s30 = ssub.s32 %s910_s21, %s1197_s26  ;;  %s134_s5 = sadd.s32 1, %s894_s17 }
  0x10   : > { %s131_s6 = sor.u32 %s130_s30, %s129_s27  ;;  %p195_p10 = pnand %p638_p7, %p194_p9 }
  0x11   : > { %p132_p11 = scmp.eq.s32.totalorder %s131_s6, 0  ;;  %s1177_s8 = sand.u32 (!%p195_p10), 1, %s890_s16  }
  0x12   : > { %198 = sbr.rel (%p195_p10) target bundleno = 330 (0x14a), region = 36  ;;  %p228_p12 = scmp.lt.s32.totalorder (!%p195_p10), %s898_s18, 11 }
  0x13   : > { %s1014_s7 = scalar_select %p132_p11, %s894_s17, %s134_s5  }
  0x14   : > { %s1020_s9 = sshll.u32 (!%p195_p10), %s1177_s8, 3  ;;  %p230_p13 = scmp.lt.s32.totalorder (!%p195_p10), %s902_s19, 1 }
  0x15   : > { %s227_s8 = scalar_lea.vmem (!%p195_p10), [#allocation3], %s1020_s9  ;;  %p642_p0 = scmp.ne.s32.totalorder (!%p195_p10), %s898_s18, 0 }
  0x17   : > { %s229_s10 = scalar_select %p228_p12, %s898_s18, 11 }
  0x18   : > { %s231_s11 = scalar_select %p230_p13, %s902_s19, 1 }
  0x19   : > { %s705_s12 = smul.u32 6, %s229_s10 }
  0x1a   : > { %s704_s13 = smul.u32 3, %s231_s11  ;;  %s641_s14 = sshll.u32 %s231_s11, 3 }
  0x1b   : > { %s240_s27 = scalar_lea.vmem %s1171_s1, %s641_s14  ;;  %245 = sbr.rel (%p642_p0) target bundleno = 34 (0x22), region = 40 }
  0x1c   : > { %s234_s30 = sadd.s32 %s705_s12, %s704_s13 }
  0x1d   : > { %s640_s5 = sshll.u32 %s234_s30, 3 }
  0x1e   : > { %s1031_s25 = scalar_lea.vmem %s1170_s0, %s640_s5 }
  0x20   : > { %v246_v0 = vld [vmem:[%s240_s27] sm:$0xff] }
  0x21   : > { %247 = vst [vmem:[#allocation2] sm:$0xff] %v246_v0 }
  0x22 PF: > { %v780_v1 = vld [vmem:[%s1172_s2 + $0xac] ss:$12 sps:$4 sm:$0xff]   ;;  %v782_v2 = vld [vmem:[%s1172_s2 + $0xa8] ss:$12 sps:$4 sm:$0xff]   ;;  %v916_v3 = vmov 0.0   ;;  %v917_v4 = vmov 0  }
  0x23   : > { %684 = vmatprep.subr.bf16.mxu1 %v916_v3  ;;  %442 = vmatprep.mubr.bf16.mxu0 %v917_v4  ;;  %v783_v5 = vld [vmem:[%s1172_s2 + $0x94] ss:$12 sps:$4 sm:$0xff]   ;;  %vm918_vm0 = vmmov 0   ;;  %v785_v6 = vld [vmem:[%s1172_s2 + $0x90] ss:$12 sps:$4 sm:$0xff]   ;;  %v492_v34 = vld [vmem:[%s1031_s25 + $0x8] sm:$0xff] }
  0x24   : > { %410 = vmatprep.subr.bf16.mxu0 %v780_v1  ;;  %700 = vmatprep.mubr.msk.bf16.mxu1 %vm918_vm0, %v916_v3  ;;  %v786_v7 = vld [vmem:[%s1172_s2 + $0x7c] ss:$12 sps:$4 sm:$0xff]   ;;  %v788_v8 = vld [vmem:[%s1172_s2 + $0x78] ss:$12 sps:$4 sm:$0xff]   ;;  %v791_v11 = vld [vmem:[%s1172_s2 + $0x60] ss:$12 sps:$4 sm:$0xff]  }
  0x25   : > { %411 = vmatpush1.bf16.msra.mxu0 %v782_v2  ;;  %v789_v9 = vld [vmem:[%s1172_s2 + $0x64] ss:$12 sps:$4 sm:$0xff]   ;;  %v792_v12 = vld [vmem:[%s1172_s2 + $0x4c] ss:$12 sps:$4 sm:$0xff]   ;;  %v794_v14 = vld [vmem:[%s1172_s2 + $0x48] ss:$12 sps:$4 sm:$0xff]  }
  0x26   : > { %412 = vmatprep.subr.bf16.mxu0 %v783_v5  ;;  %v801_v10 = vld [vmem:[%s1172_s2 + $0xb0] ss:$12 sps:$4 sm:$0xff]   ;;  %v805_v13 = vld [vmem:[%s1172_s2 + $0x98] ss:$12 sps:$4 sm:$0xff]   ;;  %v795_v15 = vld [vmem:[%s1172_s2 + $0x34] ss:$12 sps:$4 sm:$0xff]  }
  0x27   : > { %685 = vmatpush3.bf16.msra.mxu1 %v801_v10  ;;  %v806_v16 = vld [vmem:[%s1172_s2 + $0x80] ss:$12 sps:$4 sm:$0xff]   ;;  %v797_v17 = vld [vmem:[%s1172_s2 + $0x30] ss:$12 sps:$4 sm:$0xff]   ;;  %v807_v19 = vld [vmem:[%s1172_s2 + $0x68] ss:$12 sps:$4 sm:$0xff]  }
  0x28   : > { %686 = vmatprep.subr.bf16.mxu1 %v916_v3  ;;  %v798_v18 = vld [vmem:[%s1172_s2 + $0x1c] ss:$12 sps:$4 sm:$0xff]   ;;  %v800_v20 = vld [vmem:[%s1172_s2 + $0x18] ss:$12 sps:$4 sm:$0xff]   ;;  %v804_v23 = vld [vmem:[%s1172_s2] ss:$12 sps:$4 sm:$0xff]  }
  0x29   : > { %413 = vmatpush1.bf16.msra.mxu0 %v785_v6  ;;  %v802_v21 = vld [vmem:[%s1172_s2 + $0x4] ss:$12 sps:$4 sm:$0xff]   ;;  %v810_v27 = vld [vmem:[%s1172_s2 + $0x20] ss:$12 sps:$4 sm:$0xff]   ;;  %v811_v28 = vld [vmem:[%s1172_s2 + $0x8] ss:$12 sps:$4 sm:$0xff]  }
  0x2a   : > { %414 = vmatprep.subr.bf16.mxu0 %v786_v7  ;;  %v808_v22 = vld [vmem:[%s1172_s2 + $0x50] ss:$12 sps:$4 sm:$0xff]   ;;  %v248_v24 = vld [vmem:[#allocation2] sm:$0xff]  ;;  %s671_s23 = sshll.u32 %s898_s18, 1  ;;  %s541_s12 = sshll.u32 %s227_s8, 4  ;;  %s542_s12 = int_to_ptr.vmem [resolvable:$true] %s541_s12 }
  0x2b   : > { %687 = vmatpush3.bf16.msra.mxu1 %v805_v13  ;;  %v809_v25 = vld [vmem:[%s1172_s2 + $0x38] ss:$12 sps:$4 sm:$0xff]   ;;  %v249_v26 = vpack.c.bf16 %v248_v24, %v248_v24  ;;  %v669_v46 = vld [vmem:[%s1173_s3] ss:$0 sm:$0xff]  ;;  %v493_v50 = vld [vmem:[%s1031_s25 + $0x10] sm:$0xff]  ;;  %s537_s14 = sadd.s32 %s902_s19, %s671_s23  ;;  %s1182_s18 = sand.u32 1, %s890_s16  }
  0x2c   : > { %688 = vmatprep.subr.bf16.mxu1 %v916_v3  ;;  %v491_v29 = vld [vmem:[%s1031_s25] sm:$0xff]  ;;  %s672_s26 = sshll.u32 %s537_s14, 7  ;;  %s526_s27 = scalar_lea.sflag [#allocation4], %s1182_s18 }
  0x2d   : > { %415 = vmatpush1.bf16.msra.mxu0 %v788_v8  ;;  %s1120_s24 = scalar_lea.hbm %s1174_s4, %s672_s26  ;;  %s822_s19 = scalar_lea.vmem %s542_s12, 128 }
  0x2e   : > { %416 = vmatprep.subr.bf16.mxu0 %v789_v9  ;;  %p823_p1 = scmp.ne.s32.totalorder %s542_s12, %s822_s19  ;;  %s919_s30 = smov [#allocation3]  }
  0x2f   : > { %689 = vmatpush3.bf16.msra.mxu1 %v806_v16  ;;  %s826_s5 = sshll.u32 %s919_s30, 4  ;;  %s827_s5 = int_to_ptr.vmem [resolvable:$false] %s826_s5 }
  0x30   : > { %690 = vmatprep.subr.bf16.mxu1 %v916_v3  ;;  %p824_p2 = pnand %p823_p1, %p996_p3  ;;  %s828_s6 = scalar_lea.vmem %s827_s5, 256 }
  0x31   : > { %417 = vmatpush1.bf16.msra.mxu0 %v791_v11  ;;  %p829_p5 = scmp.lt.s32.totalorder %s542_s12, %s827_s5  ;;  %p830_p6 = scmp.lt.s32.totalorder %s828_s6, %s822_s19 }
  0x32   : > { %418 = vmatprep.subr.bf16.mxu0 %v792_v12  ;;  %p825_p4 = pneg %p824_p2 }
  0x33   : > { %691 = vmatpush3.bf16.msra.mxu1 %v807_v19  ;;  %p831_p7 = por %p830_p6, %p829_p5 }
  0x34   : > { %692 = vmatprep.subr.bf16.mxu1 %v916_v3 }
  0x35   : > { %419 = vmatpush1.bf16.msra.mxu0 %v794_v14  ;;  %p832_p9 = pnand %p831_p7, %p825_p4 }
  0x36   : > { %420 = vmatprep.subr.bf16.mxu0 %v795_v15 }
  0x37   : > { %693 = vmatpush3.bf16.msra.mxu1 %v808_v22 }
  0x38   : > { %694 = vmatprep.subr.bf16.mxu1 %v916_v3 }
  0x39   : > { %421 = vmatpush1.bf16.msra.mxu0 %v797_v17 }
  0x3a   : > { %422 = vmatprep.subr.bf16.mxu0 %v798_v18 }
  0x3b   : > { %695 = vmatpush3.bf16.msra.mxu1 %v809_v25 }
  0x3c   : > { %696 = vmatprep.subr.bf16.mxu1 %v916_v3 }
  0x3d   : > { %423 = vmatpush1.bf16.msra.mxu0 %v800_v20 }
  0x3e   : > { %424 = vmatprep.subr.bf16.mxu0 %v802_v21 }
  0x3f   : > { %697 = vmatpush3.bf16.msra.mxu1 %v810_v27 }
  0x40   : > { %698 = vmatprep.subr.bf16.mxu1 %v916_v3 }
  0x41   : > { %425 = vmatpush1.bf16.msra.mxu0 %v804_v23 }
  0x43   : > { %699 = vmatpush3.bf16.msra.mxu1 %v811_v28 }
  0x44   : > { %443 = vmatmul.mubr.bf16.vlgmr.msra.gmra.mxu0 %v249_v26 }
  0x46   : > { %701 = vmatmul.mubr.bf16.vlgmr.msra.gmra.mxu1 %v249_v26 }
 0x104   : > { %v444_v30 = vpop.f32.mrf.mxu0 }
 0x105   : > { %v494_v31 = vadd.f32 %v491_v29, %v444_v30 }
 0x106   : > { %v446_v32 = vpop.f32.mrf.mxu0  ;;  %v485_v38 = vpop.f32.mrf.mxu1 }
 0x107   : > { %v667_v33 = vmul.f32 -1.442695, %v494_v31  ;;  %v501_v37 = vadd.f32 %v492_v34, %v446_v32  ;;  %v515_v48 = vadd.f32 %v669_v46, %v485_v38 }
 0x108   : > { %v448_v35 = vpop.f32.mrf.mxu0  ;;  %v702_v40 = vpop.f32.mrf.mxu1 }
 0x109   : > { %812 = vpow2.f32 %v667_v33  ;;  %v668_v39 = vmul.f32 -1.442695, %v501_v37 }
 0x10a   : > { %v449_v36 = vpop.f32.mrf.mxu0  ;;  %v488_v41 = vpop.f32.mrf.mxu1 }
 0x10b   : > { %814 = vpow2.f32 %v668_v39 }
 0x10c   : > { %v703_v42 = vpop.f32.mrf.mxu1 }
 0x116   : > { %v813_v43 = vpop.eup %812 }
 0x117   : > { %v498_v44 = vadd.f32 1.0, %v813_v43 }
 0x118   : > { %v815_v45 = vpop.eup %814 }
 0x119   : > { %816 = vrcp.f32 %v498_v44  ;;  %v505_v47 = vadd.f32 1.0, %v815_v45 }
 0x11b   : > { %818 = vrcp.f32 %v505_v47 }
 0x126   : > { %v817_v49 = vpop.eup %816 }
 0x127   : > { %v516_v51 = vmul.f32 %v817_v49, %v515_v48 }
 0x128   : > { %v819_v53 = vpop.eup %818 }
 0x129   : > { %v517_v52 = vadd.f32 %v516_v51, %v493_v50  ;;  %v519_v54 = vsub.f32 1.0, %v819_v53  ;;  %v521_v57 = vmul.f32 %v819_v53, %v248_v24 }
 0x12b   : > { %820 = vtanh.f32 %v517_v52 }
 0x138   : > { %v821_v55 = vpop.eup %820 }
 0x139   : > { %v520_v56 = vmul.f32 %v821_v55, %v519_v54 }
 0x13b   : > { %v522_v58 = vadd.f32 %v521_v57, %v520_v56 }
 0x13d   : > { %523 = vst [vmem:[#allocation2] sm:$0xff] %v522_v58  ;;  %524 = vst [vmem:[%s227_s8] sm:$0xff] %v522_v58 }
 0x13e   : > { %835 = shalt.err (!%p832_p9)
}
 0x13f   : > { %s836_s8 = scalar_lea.hbm %s1120_s24, 128  ;;  %s840_s11 = scalar_lea.hbm %s1174_s4, 3072 }
 0x140   : > { %p837_p10 = scmp.ne.s32.totalorder %s1120_s24, %s836_s8  ;;  %p841_p13 = scmp.lt.s32.totalorder %s1120_s24, %s1174_s4 }
 0x141   : > { %p842_p0 = scmp.lt.s32.totalorder %s840_s11, %s836_s8 }
 0x142   : > { %p838_p11 = pnand %p837_p10, %p996_p3 }
 0x143   : > { %p843_p1 = por %p842_p0, %p841_p13 }
 0x144   : > { %p839_p12 = pneg %p838_p11 }
 0x146   : > { %p844_p2 = pnand %p843_p1, %p839_p12 }
 0x148   : > { %847 = shalt.err (!%p844_p2)
}
 0x149   : > { %706 = dma.vmem_to_hbm [thread:$0]  (%p996_p3), %s542_s12, 128, %s1120_s24, %s526_s27  }
 0x14a PF: > { %p712_p4 = scmp.ge.s32.totalorder %s914_s22, 2  ;;  %s553_s26 = sand.u32 1, %s886_s15  }
 0x14b   : > { %s554_s13 = scalar_lea.sflag [#allocation4], %s553_s26 }
 0x14c   : > { %p709_p5 = pnand %p712_p4, %p1005_p8 }
 0x14e   : > { %p710_p6 = pneg %p709_p5 }
 0x150   : > { %881 = dma.done.wait (%p710_p6), %s554_s13, 128  }
 0x151   : > { %883 = vsyncadd (%p710_p6), %s554_s13, 4294967168  ;;  %s17_s22 = sadd.s32 1, %s914_s22   ;;  %s1183_s28 = sld [smem:[#allocation6_spill]] }
 0x152   : > { %p14_p7 = scmp.ge.s32.totalorder %s17_s22, 26   ;;  %s1184_s12 = sld [smem:[#allocation7_spill]] }
 0x153   : > { %s1185_s15 = smov %s890_s16  ;;  %s1186_s16 = smov %s894_s17 }
 0x154   : > { %s1187_s17 = smov %s1014_s7  ;;  %s1188_s18 = smov %s906_s20 }
 0x155   : > { %s1189_s19 = smov %s910_s21  ;;  %16 = sbr.rel (!%p14_p7) target bundleno = 5 (0x5), region = 78 }
 0x157   : > { %s1190_s20 = smov %s1183_s28 }
 0x158   : > { %s1191_s21 = smov %s1184_s12 }
 0x15a   :  { %559 = vsyncpa [#allocation4], 1 }
 0x15b   :  { %561 = vsyncpa [#allocation4 + $0x1], 1 }

</bundles_post_ra>
